<compile_context>
chip_gen: v7x
topology: tpu7x:2x2x1
jax: 0.10.0
libtpu: 0.0.40
codegen_flags: <defaults>
</compile_context>

<pallas_src>
import jax
import jax.numpy as jnp
from jax.experimental import pallas as pl
from jax.experimental.pallas import tpu as pltpu


def linear_kernel(x_ref, wt_ref, b_ref, o_ref):
    # Hot path: single canonical MXU matmul + elementwise bias add, all in VMEM.
    x = x_ref[...]          # [B, F_in]
    wt = wt_ref[...]        # [F_in, F_out]  (pre-transposed at init; no in-kernel transpose)
    b = b_ref[...]          # [B, F_out]     (pre-broadcast at init; plain VPU add)
    acc = jnp.dot(x, wt, preferred_element_type=jnp.float32)
    o_ref[...] = (acc + b).astype(o_ref.dtype)


def evolving_model_forward(x, weight_t, bias_b):
    """x: [B, F_in] f32, weight_t: [F_in, F_out] (pre-transposed), bias_b: [B, F_out]."""
    B, F_in = x.shape
    F_out = weight_t.shape[1]
    cost = pl.CostEstimate(
        flops=2 * B * F_in * F_out,
        transcendentals=0,
        bytes_accessed=4 * (B * F_in + F_in * F_out + B * F_out + B * F_out),
    )
    return pl.pallas_call(
        linear_kernel,
        out_shape=jax.ShapeDtypeStruct((B, F_out), x.dtype),
        # Gridless call: whole arrays resident in VMEM, no pipeline machinery.
        in_specs=[
            pl.BlockSpec(memory_space=pltpu.MemorySpace.VMEM),  # x
            pl.BlockSpec(memory_space=pltpu.MemorySpace.VMEM),  # weight (pre-transposed)
            pl.BlockSpec(memory_space=pltpu.MemorySpace.VMEM),  # bias (pre-broadcast)
        ],
        out_specs=pl.BlockSpec(memory_space=pltpu.MemorySpace.VMEM),
        cost_estimate=cost,
    )(x, weight_t, bias_b)


def init_params(key, f_in, f_out, batch):
    """One-time parameter init (mimics nn.Linear uniform(-1/sqrt(fan_in), ...)).

    All layout glue happens HERE, once:
      - weight is generated in PyTorch layout [F_out, F_in] and stored transposed
        as [F_in, F_out] so the forward is a canonical x @ w_t contraction,
      - bias is stored pre-broadcast as [batch, F_out] so the forward's bias add
        needs no sublane broadcast.
    """
    kw, kb = jax.random.split(key)
    bound = 1.0 / jnp.sqrt(jnp.float32(f_in))
    weight = jax.random.uniform(kw, (f_out, f_in), jnp.float32, -bound, bound)  # PyTorch layout
    bias = jax.random.uniform(kb, (f_out,), jnp.float32, -bound, bound)
    weight_t = jnp.asarray(weight.T)                       # [F_in, F_out], stored once
    bias_b = jnp.broadcast_to(bias, (batch, f_out)).copy() # [B, F_out], stored once
    return weight, bias, weight_t, bias_b


if __name__ == "__main__":
    key = jax.random.PRNGKey(0)
    kx, kp = jax.random.split(key)

    B, F_in, F_out = 8, 10, 10          # nn.Linear(10, 10); small batch
    x = jax.random.normal(kx, (B, F_in), dtype=jnp.float32)
    weight, bias, weight_t, bias_b = init_params(kp, F_in, F_out, B)

    y = evolving_model_forward(x, weight_t, bias_b)
    y = jax.block_until_ready(y)

    # Reference check in plain JAX (same math as PyTorch's F.linear with the
    # original [F_out, F_in] weight and 1-D bias).
    y_ref = x @ weight.T + bias[None, :]
    assert jnp.allclose(y, y_ref, atol=1e-5, rtol=1e-5), "mismatch vs reference"

    print("KERNEL_OK")
</pallas_src>

<mosaic_0001>
module attributes {stable_mosaic.version = 11 : i64} {
  func.func @linear_kernel(%arg0: memref<8x10xf32, #tpu.memory_space<vmem>>, %arg1: memref<10x10xf32, #tpu.memory_space<vmem>>, %arg2: memref<8x10xf32, #tpu.memory_space<vmem>>, %arg3: memref<8x10xf32, #tpu.memory_space<vmem>>) attributes {dimension_semantics = [], scalar_prefetch = 0 : i64, scratch_operands = 0 : i64, tpu.core_type = #tpu.core_type<tc>} {
    %c0 = arith.constant 0 : index
    %c0_0 = arith.constant 0 : index
    %0 = vector.load %arg0[%c0, %c0_0] : memref<8x10xf32, #tpu.memory_space<vmem>>, vector<8x10xf32>
    %c0_1 = arith.constant 0 : index
    %c0_2 = arith.constant 0 : index
    %1 = vector.load %arg1[%c0_1, %c0_2] : memref<10x10xf32, #tpu.memory_space<vmem>>, vector<10x10xf32>
    %c0_3 = arith.constant 0 : index
    %c0_4 = arith.constant 0 : index
    %2 = vector.load %arg2[%c0_3, %c0_4] : memref<8x10xf32, #tpu.memory_space<vmem>>, vector<8x10xf32>
    %cst = arith.constant dense<0.000000e+00> : vector<8x10xf32>
    %3 = tpu.matmul %0, %1, %cst {dimension_numbers = #tpu.dot_dimension_numbers<[1], [0], [0], [1], [0, 0, 1, 1], [], []>} : vector<8x10xf32>, vector<10x10xf32>, vector<8x10xf32> -> vector<8x10xf32>
    %4 = arith.addf %3, %2 : vector<8x10xf32>
    %c0_5 = arith.constant 0 : index
    %c0_6 = arith.constant 0 : index
    %5 = vector.load %arg3[%c0_5, %c0_6] : memref<8x10xf32, #tpu.memory_space<vmem>>, vector<8x10xf32>
    tpu.vector_store %arg3[%c0_5, %c0_6], %4 {strides = array<i32>} : memref<8x10xf32, #tpu.memory_space<vmem>>, vector<8x10xf32>,
    return
  }
}

</mosaic_0001>

<bundles_post_ra>
// kernel: tpu_custom_call.1
= control target key start
LH: loop header
LB: loop body
LE: loop exit
PB: predicated region body
PF: predicated region fallthrough
CT: control target
= control target key end

     0   :  { %8 = vsyncpa [#allocation3], 0  ;;  %s349_s0 = inlined_call_operand.hbm [shape: f32[8,10], index: 0, kind: input, shape index: {}]   ;;  %s350_s1 = inlined_call_operand.hbm [shape: f32[10,10], index: 1, kind: input, shape index: {}]   ;;  %s351_s2 = inlined_call_operand.hbm [shape: f32[8,10], index: 2, kind: input, shape index: {}]   ;;  %s352_s3 = inlined_call_operand.hbm [shape: f32[8,10], index: 3, kind: output, shape index: {}]  }
   0x1   :  { %9 = vsyncpa [#allocation6], 0 }
   0x2   :  { %10 = vsyncpa [#allocation4], 0  ;;  %s271_s12 = smov [#allocation5]   ;;  %s177_s16 = scalar_lea.hbm %s350_s1, 256 }
   0x3   :  { %s26_s13 = sshll.u32 %s271_s12, 4  ;;  %p178_p0 = scmp.ne.s32.totalorder %s350_s1, %s177_s16  ;;  %s27_s13 = int_to_ptr.vmem [resolvable:$true] %s26_s13 }
   0x4   :  { %p181_p1 = scmp.lt.u32.totalorder %s177_s16, %s350_s1 }
   0x6   :  { %p183_p2 = pnand %p181_p1, %p178_p0 }
   0x8   :  { %186 = shalt.err (!%p183_p2)
}
   0x9   :  { %s187_s21 = scalar_lea.vmem %s27_s13, 256  ;;  %p192_p4 = scmp.lt.s32.totalorder %s27_s13, %s27_s13 }
   0xa   :  { %p188_p3 = scmp.ne.s32.totalorder %s27_s13, %s187_s21  ;;  %p193_p5 = scmp.lt.s32.totalorder %s187_s21, %s187_s21 }
   0xc   :  { %p194_p6 = por %p193_p5, %p192_p4 }
   0xe   :  { %p195_p7 = pnand %p194_p6, %p188_p3 }
  0x10   :  { %198 = shalt.err (!%p195_p7)
}
  0x11   :  { %s272_s22 = smov 128   ;;  %s273_s23 = smov 8  }
  0x12   :  { %32 = dma.hbm_to_vmem [thread:$0]  %s350_s1, 256, %s27_s13, [#allocation6], %s272_s22, %s272_s22, %s273_s23  }
  0x13   :  { %s274_s26 = smov [#allocation2]   ;;  %s275_s28 = smov [#allocation7]  }
  0x14   :  { %s17_s27 = sshll.u32 %s274_s26, 4  ;;  %s39_s29 = sshll.u32 %s275_s28, 4  ;;  %s18_s27 = int_to_ptr.vmem [resolvable:$true] %s17_s27  ;;  %s40_s29 = int_to_ptr.vmem [resolvable:$true] %s39_s29 }
  0x15   :  { %s199_s5 = scalar_lea.hbm %s349_s0, 128 }
  0x16   :  { %p200_p8 = scmp.ne.s32.totalorder %s349_s0, %s199_s5  ;;  %p203_p9 = scmp.lt.u32.totalorder %s199_s5, %s349_s0 }
  0x18   :  { %p205_p10 = pnand %p203_p9, %p200_p8 }
  0x1a   :  { %208 = shalt.err (!%p205_p10)
}
  0x1b   :  { %s209_s1 = scalar_lea.vmem %s18_s27, 128  ;;  %p214_p12 = scmp.lt.s32.totalorder %s18_s27, %s18_s27 }
  0x1c   :  { %p210_p11 = scmp.ne.s32.totalorder %s18_s27, %s209_s1  ;;  %p215_p13 = scmp.lt.s32.totalorder %s209_s1, %s209_s1 }
  0x1e   :  { %p216_p0 = por %p215_p13, %p214_p12 }
  0x20   :  { %p217_p1 = pnand %p216_p0, %p210_p11 }
  0x22   :  { %220 = shalt.err (!%p217_p1)
}
  0x23   :  { %20 = dma.hbm_to_vmem [thread:$0]  %s349_s0, 128, %s18_s27, [#allocation3]  }
  0x24   :  { %s221_s14 = scalar_lea.hbm %s351_s2, 128 }
  0x25   :  { %p222_p2 = scmp.ne.s32.totalorder %s351_s2, %s221_s14  ;;  %p225_p3 = scmp.lt.u32.totalorder %s221_s14, %s351_s2 }
  0x27   :  { %p227_p4 = pnand %p225_p3, %p222_p2 }
  0x29   :  { %230 = shalt.err (!%p227_p4)
}
  0x2a   :  { %s231_s19 = scalar_lea.vmem %s40_s29, 128  ;;  %p236_p6 = scmp.lt.s32.totalorder %s40_s29, %s40_s29 }
  0x2b   :  { %p232_p5 = scmp.ne.s32.totalorder %s40_s29, %s231_s19  ;;  %p237_p7 = scmp.lt.s32.totalorder %s231_s19, %s231_s19 }
  0x2d   :  { %p238_p8 = por %p237_p7, %p236_p6 }
  0x2f   :  { %p239_p9 = pnand %p238_p8, %p232_p5 }
  0x31   :  { %242 = shalt.err (!%p239_p9)
}
  0x32   :  { %42 = dma.hbm_to_vmem [thread:$0]  %s351_s2, 128, %s40_s29, [#allocation6]  }
  0x33   :  { %265 = dma.done.wait [#allocation3], 128  }
  0x34   :  { %266 = vsyncadd [#allocation3], 4294967168 }
  0x35   :  { %267 = dma.done.wait [#allocation6], 384  }
  0x36   :  { %268 = vsyncadd [#allocation6], 4294966912  ;;  %v276_v0 = vmov 0.0|0.0   ;;  %vm277_vm0 = vmmov 0   ;;  %v278_v1 = vmov 0.0   ;;  %vm60_vm1 = vcmask 1041408  }
  0x37   :  { %163 = vmatprep.subr.bf16.mxu0 %v276_v0  ;;  %160 = vmatprep.mubr.msk.f32.mxu0 %vm277_vm0, %v278_v1  ;;  %v53_v2 = vld [vmem:[#allocation5] sm:$0xff]  ;;  %v54_v3 = vld [vmem:[#allocation5 + $0x8] sm:$0x3]  ;;  %vm279_vm2 = vmmov 1   ;;  %v52_v5 = vld [vmem:[#allocation2] sm:$0xff]  ;;  %vm56_vm4 = vcmask 80896  }
  0x38   :  { %vm165_vm3 = vmpackc.low %vm60_vm1, %vm279_vm2  ;;  %v164_v4 = vpack.c.bf16 %v54_v3, %v53_v2  ;;  %v55_v6 = vld [vmem:[#allocation7] sm:$0xff]  ;;  %s280_s2 = smov [#allocation8]  }
  0x39   :  { %s141_s21 = sshll.u32 %s280_s2, 4  ;;  %s142_s21 = int_to_ptr.vmem [resolvable:$true] %s141_s21 }
  0x3a   :  { %166 = vmatpush3.bf16.msk.msra.mxu0 %vm165_vm3, %v164_v4  ;;  %s243_s22 = scalar_lea.vmem %s142_s21, 128  ;;  %p248_p11 = scmp.lt.s32.totalorder %s142_s21, %s142_s21 }
  0x3b   :  { %p244_p10 = scmp.ne.s32.totalorder %s142_s21, %s243_s22  ;;  %p249_p12 = scmp.lt.s32.totalorder %s243_s22, %s243_s22 }
  0x3d   :  { %161 = vmatmul.mubr.msk.f32.vlgmr.msra.gmra.mrb[0].mxu0 %vm56_vm4, %v52_v5  ;;  %p250_p13 = por %p249_p12, %p248_p11 }
  0x3f   :  { %p251_p0 = pnand %p250_p13, %p244_p10 }
 0x110   :  { %v130_v7 = vpop.f32.mrb[0].mxu0 }
 0x111   :  { %v131_v8 = vadd.f32 %v130_v7, %v55_v6  ;;  %v162_v9 = vpop.f32.mrb[1].mxu0 }
 0x113   :  { %134 = vst.msk [vmem:[#allocation8] sm:$0xff] %vm56_vm4, %v131_v8 }
 0x114   :  { %254 = shalt.err (!%p251_p0)
}
 0x115   :  { %s255_s25 = scalar_lea.hbm %s352_s3, 128 }
 0x116   :  { %p256_p1 = scmp.ne.s32.totalorder %s352_s3, %s255_s25  ;;  %p259_p2 = scmp.lt.u32.totalorder %s255_s25, %s352_s3 }
 0x118   :  { %p261_p3 = pnand %p259_p2, %p256_p1 }
 0x11a   :  { %264 = shalt.err (!%p261_p3)
}
 0x11b   :  { %144 = dma.vmem_to_hbm [thread:$0]  %s142_s21, 128, %s352_s3, [#allocation4]  }
 0x11c   :  { %269 = dma.done.wait [#allocation4], 128  }
 0x11d   :  { %270 = vsyncadd [#allocation4], 4294967168 }
 0x11e   :  { %148 = vsyncpa [#allocation3], 1 }
 0x11f   :  { %149 = vsyncpa [#allocation6], 1 }
 0x120   :  { %150 = vsyncpa [#allocation4], 1 }

</bundles_post_ra>
